<compile_context>
chip_gen: v7x
topology: tpu7x:2x2x1
jax: 0.10.0
libtpu: 0.0.40
codegen_flags: <defaults>
</compile_context>

<pallas_src>
import functools

import jax
import jax.numpy as jnp
from jax import lax
from jax.experimental import pallas as pl
from jax.experimental.pallas import tpu as pltpu

LANE = 128     # TPU vreg lane width
SUBLANE = 8    # TPU vreg sublane granule


def _round_up(n, m):
    return ((n + m - 1) // m) * m


def mlp_kernel(x_ref,
               w1_ref, b1_ref,
               w2_ref, b2_ref,
               w3_ref, b3_ref,
               w4_ref, b4_ref,
               o_ref, *, n_chunks):
    """One batch tile. x block is (tb, in_dim) row-major; every activation is
    features-major (feat_pad, chunk) so intermediates stay lane-dense and the
    output rows are written with lane-dense stores."""
    tb = x_ref.shape[0]
    cs = tb // n_chunks  # static chunk size

    for c in range(n_chunks):  # static unroll: independent chunks -> MXU/VPU overlap
        lo, hi = c * cs, (c + 1) * cs
        xc = x_ref[lo:hi, :].astype(jnp.bfloat16)              # (cs, in_dim)

        # layer 1: contract over in_dim -> features-major (64, cs)
        h = lax.dot_general(w1_ref[...], xc,
                            (((1,), (1,)), ((), ())),
                            preferred_element_type=jnp.float32)
        h = jnp.maximum(h + b1_ref[...], 0.0)

        h = jnp.dot(w2_ref[...], h.astype(jnp.bfloat16),
                    preferred_element_type=jnp.float32)
        h = jnp.maximum(h + b2_ref[...], 0.0)

        h = jnp.dot(w3_ref[...], h.astype(jnp.bfloat16),
                    preferred_element_type=jnp.float32)
        h = jnp.maximum(h + b3_ref[...], 0.0)

        h = jnp.dot(w4_ref[...], h.astype(jnp.bfloat16),
                    preferred_element_type=jnp.float32)
        h = h + b4_ref[...]

        o_ref[:, lo:hi] = jax.nn.sigmoid(h).astype(o_ref.dtype)


def _pack_params(params):
    """bf16 weights pre-transposed to (out_pad, in_pad); f32 biases (out_pad, 1).

    Out-features are padded only to a multiple of 8 sublanes; each layer's
    in_pad equals the previous layer's out_pad.  Padded weight rows and padded
    bias entries are zero, so padded feature rows stay exactly 0 through ReLU.
    """
    in_dim = params["w1"].shape[0]
    out_dim = params["w4"].shape[1]
    dims = [(in_dim, 64), (64, 32), (32, 16), (16, out_dim)]
    packed = {}
    prev_pad = in_dim  # layer-1 contraction dim stays = in_dim
    for i, (fi, fo) in enumerate(dims, start=1):
        fo_p = _round_up(fo, SUBLANE)
        w = params[f"w{i}"]                       # (fi, fo), math layout x @ W
        b = params[f"b{i}"]                       # (1, fo)
        wt = jnp.zeros((fo_p, prev_pad), jnp.bfloat16)
        wt = wt.at[:fo, :fi].set(w.T.astype(jnp.bfloat16))
        bt = jnp.zeros((fo_p, 1), jnp.float32).at[:fo, 0].set(b[0])
        packed[f"w{i}"] = wt
        packed[f"b{i}"] = bt
        prev_pad = fo_p
    return packed


def mlp_forward(x, params, *, tb=2048):
    """x: (B, input_dim) float32. Returns (B, out_dim) float32 == Model.forward."""
    B, in_dim = x.shape
    out_dim = params["w4"].shape[1]
    out_pad = _round_up(out_dim, SUBLANE)

    # ---- batch tile selection --------------------------------------------
    if B <= LANE:
        # single exact block: no remainder handling / padding needed
        tb = _round_up(B, SUBLANE)
    else:
        tb = min(tb, _round_up(B, LANE))
        # split large batches into >=2 (target ~4) grid steps so both v7x
        # TensorCores get work; 512 floor keeps the ~0.35us/step pipeline
        # overhead amortized on single-TC v5e/v6e.
        tb = min(tb, max(4 * LANE, _round_up(pl.cdiv(B, 4), 2 * LANE)))

    grid = (pl.cdiv(B, tb),)
    b_pad = grid[0] * tb
    if b_pad != B:
        # batch-only zero pad (no transpose / relayout); padded columns are
        # sliced off below.
        x = jnp.pad(x, ((0, b_pad - B), (0, 0)))

    # two independent half-chunks per tile when the halves stay lane-dense
    n_chunks = 2 if (tb % (2 * LANE) == 0) else 1

    p = _pack_params(params)
    operands = (x,
                p["w1"], p["b1"], p["w2"], p["b2"],
                p["w3"], p["b3"], p["w4"], p["b4"])

    # weights/biases: full, grid-invariant blocks (stay resident in VMEM)
    full = lambda a: pl.BlockSpec(a.shape, lambda i: (0, 0))
    in_specs = [pl.BlockSpec((tb, in_dim), lambda i: (i, 0))]
    in_specs += [full(a) for a in operands[1:]]

    flops = 2 * b_pad * (in_dim * 64 + 64 * 32 + 32 * 16 + 16 * out_pad)
    bytes_accessed = int(4 * x.size
                         + sum(int(v.size) * v.dtype.itemsize for v in p.values())
                         + 4 * out_pad * b_pad)

    out_t = pl.pallas_call(
        functools.partial(mlp_kernel, n_chunks=n_chunks),
        out_shape=jax.ShapeDtypeStruct((out_pad, b_pad), jnp.float32),
        grid=grid,
        in_specs=in_specs,
        out_specs=pl.BlockSpec((out_pad, tb), lambda i: (0, i)),
        compiler_params=pltpu.CompilerParams(
            dimension_semantics=("parallel",)),
        cost_estimate=pl.CostEstimate(
            flops=flops,
            transcendentals=out_pad * b_pad,
            bytes_accessed=bytes_accessed),
    )(*operands)

    # back to row-major (B, out_dim) -- tiny slice + transpose
    return out_t[:out_dim, :B].T


def init_params(key, input_dim, output_dim):
    """Deterministic parameter init mirroring nn.Linear shapes.

    torch nn.Linear(in, out) has weight (out, in); we store the transpose
    (in, out) so the math is x @ W + b.
    """
    dims = [(input_dim, 64), (64, 32), (32, 16), (16, output_dim)]
    params = {}
    for i, (fan_in, fan_out) in enumerate(dims, start=1):
        key, kw, kb = jax.random.split(key, 3)
        bound = 1.0 / jnp.sqrt(float(fan_in))
        params[f"w{i}"] = jax.random.uniform(
            kw, (fan_in, fan_out), jnp.float32, minval=-bound, maxval=bound)
        params[f"b{i}"] = jax.random.uniform(
            kb, (1, fan_out), jnp.float32, minval=-bound, maxval=bound)
    return params


def reference_forward(x, params):
    h = x
    for i in range(1, 4):
        h = jnp.maximum(h @ params[f"w{i}"] + params[f"b{i}"], 0.0)
    h = h @ params["w4"] + params["b4"]
    return jax.nn.sigmoid(h)


if __name__ == "__main__":
    input_dim = 8   # Titanic-style feature count
    output_dim = 1  # survival probability
    batch = 8

    key = jax.random.PRNGKey(0)
    key, kx = jax.random.split(key)
    x = jax.random.normal(kx, (batch, input_dim), jnp.float32)

    params = init_params(key, input_dim, output_dim)

    out = mlp_forward(x, params)
    jax.block_until_ready(out)

    ref = reference_forward(x, params)
    assert out.shape == (batch, output_dim)
    # bf16 MXU operands (f32 accumulate) -> compare against f32 reference with
    # a loosened tolerance; sigmoid outputs are in [0, 1].
    max_err = float(jnp.max(jnp.abs(out - ref)))
    assert jnp.allclose(out, ref, atol=2e-2, rtol=0.0), max_err

    print("KERNEL_OK")
</pallas_src>

<mosaic_0001>
module attributes {stable_mosaic.version = 11 : i64} {
  func.func @mlp_kernel(%arg0: i32, %arg1: memref<8x8xf32, #tpu.memory_space<vmem>>, %arg2: memref<64x8xbf16, #tpu.memory_space<vmem>>, %arg3: memref<64x1xf32, #tpu.memory_space<vmem>>, %arg4: memref<32x64xbf16, #tpu.memory_space<vmem>>, %arg5: memref<32x1xf32, #tpu.memory_space<vmem>>, %arg6: memref<16x32xbf16, #tpu.memory_space<vmem>>, %arg7: memref<16x1xf32, #tpu.memory_space<vmem>>, %arg8: memref<8x16xbf16, #tpu.memory_space<vmem>>, %arg9: memref<8x1xf32, #tpu.memory_space<vmem>>, %arg10: memref<8x8xf32, #tpu.memory_space<vmem>>) attributes {dimension_semantics = [#tpu.dimension_semantics<parallel>], iteration_bounds = array<i64: 1>, scalar_prefetch = 0 : i64, scratch_operands = 0 : i64, tpu.core_type = #tpu.core_type<tc>, window_params = [{transform_indices = @transform_0, window_bounds = array<i64: 8, 8>}, {pipeline_mode = #tpu.pipeline_mode<synchronous>, transform_indices = @transform_1, window_bounds = array<i64: 64, 8>}, {pipeline_mode = #tpu.pipeline_mode<synchronous>, transform_indices = @transform_2, window_bounds = array<i64: 64, 1>}, {pipeline_mode = #tpu.pipeline_mode<synchronous>, transform_indices = @transform_3, window_bounds = array<i64: 32, 64>}, {pipeline_mode = #tpu.pipeline_mode<synchronous>, transform_indices = @transform_4, window_bounds = array<i64: 32, 1>}, {pipeline_mode = #tpu.pipeline_mode<synchronous>, transform_indices = @transform_5, window_bounds = array<i64: 16, 32>}, {pipeline_mode = #tpu.pipeline_mode<synchronous>, transform_indices = @transform_6, window_bounds = array<i64: 16, 1>}, {pipeline_mode = #tpu.pipeline_mode<synchronous>, transform_indices = @transform_7, window_bounds = array<i64: 8, 16>}, {pipeline_mode = #tpu.pipeline_mode<synchronous>, transform_indices = @transform_8, window_bounds = array<i64: 8, 1>}, {transform_indices = @transform_9, window_bounds = array<i64: 8, 8>}]} {
    %c0 = arith.constant 0 : index
    %c0_0 = arith.constant 0 : index
    %0 = vector.load %arg1[%c0, %c0_0] : memref<8x8xf32, #tpu.memory_space<vmem>>, vector<8x8xf32>
    %1 = arith.truncf %0 : vector<8x8xf32> to vector<8x8xbf16>
    %c0_1 = arith.constant 0 : index
    %c0_2 = arith.constant 0 : index
    %2 = vector.load %arg2[%c0_1, %c0_2] : memref<64x8xbf16, #tpu.memory_space<vmem>>, vector<64x8xbf16>
    %cst = arith.constant dense<0.000000e+00> : vector<64x8xf32>
    %3 = tpu.matmul %2, %1, %cst {dimension_numbers = #tpu.dot_dimension_numbers<[1], [1], [0], [0], [0, 0, 1, 0], [], []>} : vector<64x8xbf16>, vector<8x8xbf16>, vector<64x8xf32> -> vector<64x8xf32>
    %c0_3 = arith.constant 0 : index
    %c0_4 = arith.constant 0 : index
    %4 = vector.load %arg3[%c0_3, %c0_4] : memref<64x1xf32, #tpu.memory_space<vmem>>, vector<64x1xf32>
    %5 = vector.broadcast %4 : vector<64x1xf32> to vector<64x8xf32>
    %6 = arith.addf %3, %5 : vector<64x8xf32>
    %cst_5 = arith.constant 0.000000e+00 : f32
    %7 = vector.broadcast %cst_5 : f32 to vector<64x8xf32>
    %8 = arith.maximumf %6, %7 : vector<64x8xf32>
    %c0_6 = arith.constant 0 : index
    %c0_7 = arith.constant 0 : index
    %9 = vector.load %arg4[%c0_6, %c0_7] : memref<32x64xbf16, #tpu.memory_space<vmem>>, vector<32x64xbf16>
    %10 = arith.truncf %8 : vector<64x8xf32> to vector<64x8xbf16>
    %cst_8 = arith.constant dense<0.000000e+00> : vector<32x8xf32>
    %11 = tpu.matmul %9, %10, %cst_8 {dimension_numbers = #tpu.dot_dimension_numbers<[1], [0], [0], [1], [0, 0, 1, 1], [], []>} : vector<32x64xbf16>, vector<64x8xbf16>, vector<32x8xf32> -> vector<32x8xf32>
    %c0_9 = arith.constant 0 : index
    %c0_10 = arith.constant 0 : index
    %12 = vector.load %arg5[%c0_9, %c0_10] : memref<32x1xf32, #tpu.memory_space<vmem>>, vector<32x1xf32>
    %13 = vector.broadcast %12 : vector<32x1xf32> to vector<32x8xf32>
    %14 = arith.addf %11, %13 : vector<32x8xf32>
    %cst_11 = arith.constant 0.000000e+00 : f32
    %15 = vector.broadcast %cst_11 : f32 to vector<32x8xf32>
    %16 = arith.maximumf %14, %15 : vector<32x8xf32>
    %c0_12 = arith.constant 0 : index
    %c0_13 = arith.constant 0 : index
    %17 = vector.load %arg6[%c0_12, %c0_13] : memref<16x32xbf16, #tpu.memory_space<vmem>>, vector<16x32xbf16>
    %18 = arith.truncf %16 : vector<32x8xf32> to vector<32x8xbf16>
    %cst_14 = arith.constant dense<0.000000e+00> : vector<16x8xf32>
    %19 = tpu.matmul %17, %18, %cst_14 {dimension_numbers = #tpu.dot_dimension_numbers<[1], [0], [0], [1], [0, 0, 1, 1], [], []>} : vector<16x32xbf16>, vector<32x8xbf16>, vector<16x8xf32> -> vector<16x8xf32>
    %c0_15 = arith.constant 0 : index
    %c0_16 = arith.constant 0 : index
    %20 = vector.load %arg7[%c0_15, %c0_16] : memref<16x1xf32, #tpu.memory_space<vmem>>, vector<16x1xf32>
    %21 = vector.broadcast %20 : vector<16x1xf32> to vector<16x8xf32>
    %22 = arith.addf %19, %21 : vector<16x8xf32>
    %cst_17 = arith.constant 0.000000e+00 : f32
    %23 = vector.broadcast %cst_17 : f32 to vector<16x8xf32>
    %24 = arith.maximumf %22, %23 : vector<16x8xf32>
    %c0_18 = arith.constant 0 : index
    %c0_19 = arith.constant 0 : index
    %25 = vector.load %arg8[%c0_18, %c0_19] : memref<8x16xbf16, #tpu.memory_space<vmem>>, vector<8x16xbf16>
    %26 = arith.truncf %24 : vector<16x8xf32> to vector<16x8xbf16>
    %cst_20 = arith.constant dense<0.000000e+00> : vector<8x8xf32>
    %27 = tpu.matmul %25, %26, %cst_20 {dimension_numbers = #tpu.dot_dimension_numbers<[1], [0], [0], [1], [0, 0, 1, 1], [], []>} : vector<8x16xbf16>, vector<16x8xbf16>, vector<8x8xf32> -> vector<8x8xf32>
    %c0_21 = arith.constant 0 : index
    %c0_22 = arith.constant 0 : index
    %28 = vector.load %arg9[%c0_21, %c0_22] : memref<8x1xf32, #tpu.memory_space<vmem>>, vector<8x1xf32>
    %29 = vector.broadcast %28 : vector<8x1xf32> to vector<8x8xf32>
    %30 = arith.addf %27, %29 : vector<8x8xf32>
    %31 = arith.negf %30 : vector<8x8xf32>
    %32 = math.exp %31 : vector<8x8xf32>
    %cst_23 = arith.constant 1.000000e+00 : f32
    %33 = vector.broadcast %cst_23 : f32 to vector<8x8xf32>
    %34 = arith.addf %33, %32 : vector<8x8xf32>
    %35 = arith.divf %33, %34 : vector<8x8xf32>
    %c0_24 = arith.constant 0 : index
    %c0_25 = arith.constant 0 : index
    %36 = vector.load %arg10[%c0_24, %c0_25] : memref<8x8xf32, #tpu.memory_space<vmem>>, vector<8x8xf32>
    tpu.vector_store %arg10[%c0_24, %c0_25], %35 {strides = array<i32>} : memref<8x8xf32, #tpu.memory_space<vmem>>, vector<8x8xf32>,
    return
  }
  func.func @transform_0(%arg0: i32) -> (i32, i32) {
    %c0_i32 = arith.constant 0 : i32
    %c0_i32_0 = arith.constant 0 : i32
    return %arg0, %c0_i32 : i32, i32
  }
  func.func @transform_1(%arg0: i32) -> (i32, i32) {
    %c0_i32 = arith.constant 0 : i32
    %c0_i32_0 = arith.constant 0 : i32
    %c0_i32_1 = arith.constant 0 : i32
    return %c0_i32, %c0_i32_0 : i32, i32
  }
  func.func @transform_2(%arg0: i32) -> (i32, i32) {
    %c0_i32 = arith.constant 0 : i32
    %c0_i32_0 = arith.constant 0 : i32
    %c0_i32_1 = arith.constant 0 : i32
    return %c0_i32, %c0_i32_0 : i32, i32
  }
  func.func @transform_3(%arg0: i32) -> (i32, i32) {
    %c0_i32 = arith.constant 0 : i32
    %c0_i32_0 = arith.constant 0 : i32
    %c0_i32_1 = arith.constant 0 : i32
    return %c0_i32, %c0_i32_0 : i32, i32
  }
  func.func @transform_4(%arg0: i32) -> (i32, i32) {
    %c0_i32 = arith.constant 0 : i32
    %c0_i32_0 = arith.constant 0 : i32
    %c0_i32_1 = arith.constant 0 : i32
    return %c0_i32, %c0_i32_0 : i32, i32
  }
  func.func @transform_5(%arg0: i32) -> (i32, i32) {
    %c0_i32 = arith.constant 0 : i32
    %c0_i32_0 = arith.constant 0 : i32
    %c0_i32_1 = arith.constant 0 : i32
    return %c0_i32, %c0_i32_0 : i32, i32
  }
  func.func @transform_6(%arg0: i32) -> (i32, i32) {
    %c0_i32 = arith.constant 0 : i32
    %c0_i32_0 = arith.constant 0 : i32
    %c0_i32_1 = arith.constant 0 : i32
    return %c0_i32, %c0_i32_0 : i32, i32
  }
  func.func @transform_7(%arg0: i32) -> (i32, i32) {
    %c0_i32 = arith.constant 0 : i32
    %c0_i32_0 = arith.constant 0 : i32
    %c0_i32_1 = arith.constant 0 : i32
    return %c0_i32, %c0_i32_0 : i32, i32
  }
  func.func @transform_8(%arg0: i32) -> (i32, i32) {
    %c0_i32 = arith.constant 0 : i32
    %c0_i32_0 = arith.constant 0 : i32
    %c0_i32_1 = arith.constant 0 : i32
    return %c0_i32, %c0_i32_0 : i32, i32
  }
  func.func @transform_9(%arg0: i32) -> (i32, i32) {
    %c0_i32 = arith.constant 0 : i32
    %c0_i32_0 = arith.constant 0 : i32
    return %c0_i32, %arg0 : i32, i32
  }
}

</mosaic_0001>

<bundles_post_ra>
// kernel: tpu_custom_call.1
= control target key start
LH: loop header
LB: loop body
LE: loop exit
PB: predicated region body
PF: predicated region fallthrough
CT: control target
= control target key end

     0   :  { %vm112_vm0 = vcmask 64512   ;;  %v554_v3 = vmov 0   ;;  %s701_s0 = inlined_call_operand.vmem [shape: f32[8,8], index: 0, kind: input, shape index: {}]   ;;  %s702_s1 = inlined_call_operand.vmem [shape: bf16[64,8], index: 1, kind: input, shape index: {}]   ;;  %s703_s2 = inlined_call_operand.vmem [shape: f32[64,1], index: 2, kind: input, shape index: {}]   ;;  %s704_s3 = inlined_call_operand.vmem [shape: bf16[32,64], index: 3, kind: input, shape index: {}]   ;;  %s705_s4 = inlined_call_operand.vmem [shape: f32[32,1], index: 4, kind: input, shape index: {}]   ;;  %s706_s5 = inlined_call_operand.vmem [shape: bf16[16,32], index: 5, kind: input, shape index: {}]   ;;  %s707_s6 = inlined_call_operand.vmem [shape: f32[16,1], index: 6, kind: input, shape index: {}]   ;;  %s708_s7 = inlined_call_operand.vmem [shape: bf16[8,16], index: 7, kind: input, shape index: {}]   ;;  %s709_s8 = inlined_call_operand.vmem [shape: f32[8,1], index: 8, kind: input, shape index: {}]   ;;  %s710_s9 = inlined_call_operand.hbm [shape: f32[8,8], index: 9, kind: output, shape index: {}]  }
   0x1   :  { %v34_v0 = vld [vmem:[%s701_s0] sm:$0xff]  ;;  %517 = vset.pattern.permute.xlu0 %v554_v3  ;;  %518 = vset.pattern.permute.xlu1 %v554_v3  ;;  %v46_v6 = vld [vmem:[%s703_s2 + $0x10] sm:$0xff]  ;;  %v45_v7 = vld [vmem:[%s703_s2 + $0x8] sm:$0xff] }
   0x2   :  { %v35_v1 = vpack.c.bf16 %v34_v0, %v34_v0  ;;  %v519_v2 = vld [vmem:[%s702_s1] sm:$0xff]   ;;  %64 = vperm.xlu1 %518, %v46_v6   ;;  %v520_v8 = vld [vmem:[%s702_s1 + $0x8] sm:$0xff]   ;;  %v47_v9 = vld [vmem:[%s703_s2 + $0x18] sm:$0xff] }
   0x3   :  { %478 = vmatprep.mubr.msk.bf16.mxu0 %vm112_vm0, %v519_v2  ;;  %v44_v5 = vld [vmem:[%s703_s2] sm:$0xff]  ;;  %v521_v10 = vld [vmem:[%s702_s1 + $0x10] sm:$0xff]   ;;  %v49_v12 = vld [vmem:[%s703_s2 + $0x28] sm:$0xff] }
   0x4   :  { %512 = vmatprep.subr.msk.bf16.mxu0 %vm112_vm0, %v35_v1  ;;  %v126_v4 = vsel %vm112_vm0, %v35_v1, 0  ;;  %54 = vperm.xlu0 %517, %v44_v5   ;;  %v48_v11 = vld [vmem:[%s703_s2 + $0x20] sm:$0xff] }
   0x5   :  { %477 = vmatpush3.bf16.xpose.msra.mxu0 %v126_v4 }
   0x6   :  { %69 = vperm.xlu1 %518, %v47_v9  }
   0x8   :  { %59 = vperm.xlu0 %517, %v45_v7  }
   0xc   :  { %479 = vmatmul.mubr.msk.bf16.vlgmr.msra.gmra.mrb[0].mxu0 %vm112_vm0, %v520_v8 }
   0xd   :  { %14 = vsyncpa [#allocation3], 0  ;;  %482 = vmatprep.mubr.msk.bf16.mxu0 %vm112_vm0, %v521_v10  ;;  %74 = vperm.xlu0 %517, %v48_v11   ;;  %v50_v13 = vld [vmem:[%s703_s2 + $0x30] sm:$0xff]  ;;  %v522_v14 = vld [vmem:[%s702_s1 + $0x18] sm:$0xff]   ;;  %vm243_vm1 = vcmask 523264   ;;  %v555_v61 = vmov 0.0  }
   0xe   :  { %79 = vperm.xlu1 %518, %v49_v12   ;;  %v51_v15 = vld [vmem:[%s703_s2 + $0x38] sm:$0xff]  ;;  %v209_v16 = vld [vmem:[%s705_s4] sm:$0xff]  ;;  %v210_v17 = vld [vmem:[%s705_s4 + $0x8] sm:$0xff]  ;;  %498 = vmatprep.subr.bf16.mxu0 %v555_v61  ;;  %vm556_vm2 = vmmov 0   ;;  %vm324_vm3 = vcmask 261120   ;;  %vm379_vm4 = vcmask 130048  }
   0xf   :  { %v211_v18 = vld [vmem:[%s705_s4 + $0x10] sm:$0xff]  ;;  %v212_v19 = vld [vmem:[%s705_s4 + $0x18] sm:$0xff]  ;;  %v307_v20 = vld [vmem:[%s707_s6] sm:$0xff] }
  0x10   :  { %v308_v21 = vld [vmem:[%s707_s6 + $0x8] sm:$0xff]  ;;  %v373_v22 = vld [vmem:[%s709_s8] sm:$0xff] }
  0x11   :  { %84 = vperm.xlu0 %517, %v50_v13   ;;  %v523_v23 = vld [vmem:[%s704_s3] sm:$0xff]   ;;  %v524_v60 = vld [vmem:[%s704_s3 + $0x8] sm:$0xff]  }
  0x12   :  { %89 = vperm.xlu1 %518, %v51_v15   ;;  %494 = vmatprep.mubr.msk.bf16.mxu1 %vm243_vm1, %v523_v23 }
  0x14   :  { %483 = vmatmul.mubr.msk.bf16.gmra.mrb[4].mxu0 %vm112_vm0, %v522_v14 }
  0x15   :  { %215 = vperm.xlu0 %517, %v209_v16   ;;  %502 = vmatprep.mubr.msk.bf16.mxu0 %vm556_vm2, %v555_v61  ;;  %v525_v16 = vld [vmem:[%s706_s5] sm:$0xff]   ;;  %s557_s5 = smov [#allocation2]  }
  0x16   :  { %220 = vperm.xlu1 %518, %v210_v17   ;;  %s436_s28 = sshll.u32 %s557_s5, 4  ;;  %s437_s28 = int_to_ptr.vmem [resolvable:$true] %s436_s28 }
  0x17   :  { %p535_p1 = scmp.lt.s32.totalorder %s437_s28, %s437_s28 }
  0x19   :  { %225 = vperm.xlu0 %517, %v211_v18  }
  0x1a   :  { %230 = vperm.xlu1 %518, %v212_v19  }
  0x1d   :  { %311 = vperm.xlu0 %517, %v307_v20  }
  0x1e   :  { %316 = vperm.xlu1 %518, %v308_v21  }
  0x21   :  { %376 = vperm.xlu0 %517, %v373_v22  }
  0x81   :  { %v65_v25 = vpop.permute.xlu1 %64 }
  0x83   :  { %v55_v24 = vpop.permute.xlu0 %54 }
  0x85   :  { %v70_v27 = vpop.permute.xlu1 %69 }
  0x87   :  { %v60_v26 = vpop.permute.xlu0 %59 }
  0x8c   :  { %v75_v31 = vpop.permute.xlu0 %74 }
  0x8d   :  { %v80_v36 = vpop.permute.xlu1 %79 }
  0x90   :  { %v85_v43 = vpop.permute.xlu0 %84 }
  0x91   :  { %v90_v48 = vpop.permute.xlu1 %89 }
  0x94   :  { %v216_v62 = vpop.permute.xlu0 %215 }
  0x95   :  { %v221_v63 = vpop.permute.xlu1 %220 }
  0x98   :  { %v226_v0 = vpop.permute.xlu0 %225 }
  0x99   :  { %v231_v4 = vpop.permute.xlu1 %230 }
  0x9c   :  { %v312_v17 = vpop.permute.xlu0 %311 }
  0x9d   :  { %v317_v21 = vpop.permute.xlu1 %316 }
  0xdf   :  { %v480_v28 = vpop.f32.mrb[0].mxu0 }
  0xe0   :  { %v171_v29 = vadd.f32 %v480_v28, %v65_v25  ;;  %v162_v30 = vpop.f32.mrb[1].mxu0  ;;  %v371_v28 = vld [vmem:[%s708_s7] sm:$0xf]  ;;  %s530_s7 = scalar_lea.vmem %s437_s28, 128 }
  0xe1   :  { %v163_v32 = vadd.f32 %v162_v30, %v55_v24  ;;  %v481_v33 = vpop.f32.mrb[2].mxu0  ;;  %p531_p0 = scmp.ne.s32.totalorder %s437_s28, %s530_s7  ;;  %p536_p2 = scmp.lt.s32.totalorder %s530_s7, %s530_s7 }
  0xe2   :  { %v174_v34 = vadd.f32 %v481_v33, %v70_v27  ;;  %v165_v35 = vpop.f32.mrb[3].mxu0  ;;  %v195_v38 = vmax.f32 %v171_v29, 0.0  ;;  %v377_v29 = vpop.permute.xlu0 %376 }
  0xe3   :  { %v166_v37 = vadd.f32 %v165_v35, %v60_v26  ;;  %v193_v40 = vmax.f32 %v163_v32, 0.0  ;;  %p537_p3 = por %p536_p2, %p535_p1 }
  0xe4   :  { %v196_v39 = vmax.f32 %v174_v34, 0.0 }
  0xe5   :  { %v194_v41 = vmax.f32 %v166_v37, 0.0  ;;  %p538_p4 = pnand %p537_p3, %p531_p0 }
  0xe6   :  { %v206_v42 = vpack.c.bf16 %v196_v39, %v195_v38 }
  0xe7   :  { %v484_v44 = vpop.f32.mrb[4].mxu0  ;;  %v205_v45 = vpack.c.bf16 %v194_v41, %v193_v40 }
  0xe8   :  { %v187_v46 = vadd.f32 %v484_v44, %v85_v43  ;;  %v178_v47 = vpop.f32.mrb[5].mxu0 }
  0xe9   :  { %v179_v49 = vadd.f32 %v178_v47, %v75_v31  ;;  %v485_v50 = vpop.f32.mrb[6].mxu0  ;;  %486 = vmatprep.subr.bf16.mxu1 %v205_v45 }
  0xea   :  { %v190_v51 = vadd.f32 %v485_v50, %v90_v48  ;;  %v181_v52 = vpop.f32.mrb[7].mxu0  ;;  %487 = vmatpush3.bf16.msra.mxu1 %v205_v45  ;;  %v199_v54 = vmax.f32 %v187_v46, 0.0 }
  0xeb   :  { %v182_v53 = vadd.f32 %v181_v52, %v80_v36  ;;  %488 = vmatprep.subr.bf16.mxu1 %v206_v42  ;;  %v197_v56 = vmax.f32 %v179_v49, 0.0 }
  0xec   :  { %v200_v55 = vmax.f32 %v190_v51, 0.0 }
  0xed   :  { %v198_v57 = vmax.f32 %v182_v53, 0.0 }
  0xee   :  { %v208_v58 = vpack.c.bf16 %v200_v55, %v199_v54  ;;  %489 = vmatpush3.bf16.msra.mxu1 %v206_v42 }
  0xef   :  { %v207_v59 = vpack.c.bf16 %v198_v57, %v197_v56 }
  0xf1   :  { %490 = vmatprep.subr.bf16.mxu1 %v207_v59 }
  0xf2   :  { %491 = vmatpush3.bf16.msra.mxu1 %v207_v59 }
  0xf3   :  { %492 = vmatprep.subr.bf16.mxu1 %v208_v58 }
  0xf6   :  { %493 = vmatpush3.bf16.msra.mxu1 %v208_v58 }
  0xf7   :  { %506 = vmatprep.subr.bf16.mxu1 %v555_v61 }
  0xf9   :  { %495 = vmatmul.mubr.msk.bf16.vlgmr.msra.gmra.mrb[0].mxu1 %vm243_vm1, %v524_v60 }
  0xfa   :  { %508 = vmatprep.mubr.msk.bf16.mxu1 %vm556_vm2, %v555_v61 }
 0x1cc   :  { %v496_v1 = vpop.f32.mrb[0].mxu1 }
 0x1cd   :  { %v293_v2 = vadd.f32 %v496_v1, %v226_v0  ;;  %v284_v3 = vpop.f32.mrb[1].mxu1 }
 0x1ce   :  { %v285_v5 = vadd.f32 %v284_v3, %v216_v62  ;;  %v497_v6 = vpop.f32.mrb[2].mxu1 }
 0x1cf   :  { %v296_v7 = vadd.f32 %v497_v6, %v231_v4  ;;  %v287_v8 = vpop.f32.mrb[3].mxu1  ;;  %v301_v10 = vmax.f32 %v293_v2, 0.0 }
 0x1d0   :  { %v288_v9 = vadd.f32 %v287_v8, %v221_v63  ;;  %v299_v12 = vmax.f32 %v285_v5, 0.0 }
 0x1d1   :  { %v302_v11 = vmax.f32 %v296_v7, 0.0 }
 0x1d2   :  { %v300_v13 = vmax.f32 %v288_v9, 0.0 }
 0x1d3   :  { %v306_v14 = vpack.c.bf16 %v302_v11, %v301_v10 }
 0x1d4   :  { %v305_v15 = vpack.c.bf16 %v300_v13, %v299_v12 }
 0x1d6   :  { %499 = vmatpush3.bf16.msra.mxu0 %v305_v15 }
 0x1d7   :  { %500 = vmatprep.subr.bf16.mxu0 %v555_v61 }
 0x1da   :  { %501 = vmatpush3.bf16.msra.mxu0 %v306_v14 }
 0x1dd   :  { %503 = vmatmul.mubr.msk.bf16.vlgmr.msra.gmra.mrb[8].mxu0 %vm324_vm3, %v525_v16 }
 0x2b0   :  { %v362_v18 = vpop.f32.mrb[8].mxu0 }
 0x2b1   :  { %v363_v19 = vadd.f32 %v362_v18, %v312_v17  ;;  %v504_v20 = vpop.f32.mrb[9].mxu0 }
 0x2b2   :  { %v365_v22 = vpop.f32.mrb[10].mxu0 }
 0x2b3   :  { %v366_v23 = vadd.f32 %v365_v22, %v317_v21  ;;  %v505_v24 = vpop.f32.mrb[11].mxu0  ;;  %v369_v25 = vmax.f32 %v363_v19, 0.0 }
 0x2b5   :  { %v370_v26 = vmax.f32 %v366_v23, 0.0 }
 0x2b7   :  { %v372_v27 = vpack.c.bf16 %v370_v26, %v369_v25 }
 0x2b9   :  { %507 = vmatpush3.bf16.msra.mxu1 %v372_v27 }
 0x2bc   :  { %509 = vmatmul.mubr.msk.bf16.vlgmr.msra.gmra.mrb[4].mxu1 %vm379_vm4, %v371_v28 }
 0x38f   :  { %v417_v30 = vpop.f32.mrb[4].mxu1 }
 0x390   :  { %v418_v31 = vadd.f32 %v417_v30, %v377_v29  ;;  %v510_v32 = vpop.f32.mrb[5].mxu1 }
 0x391   :  { %v420_v33 = vpop.f32.mrb[6].mxu1 }
 0x392   :  { %v459_v34 = vmul.f32 -1.442695, %v418_v31  ;;  %v511_v35 = vpop.f32.mrb[7].mxu1 }
 0x394   :  { %526 = vpow2.f32 %v459_v34 }
 0x39e   :  { %v527_v36 = vpop.eup %526 }
 0x39f   :  { %v426_v37 = vadd.f32 1.0, %v527_v36 }
 0x3a1   :  { %528 = vrcp.f32 %v426_v37 }
 0x3ab   :  { %v529_v38 = vpop.eup %528 }
 0x3ac   :  { %429 = vst.msk [vmem:[#allocation2] sm:$0xff] %vm112_vm0, %v529_v38 }
 0x3ad   :  { %541 = shalt.err (!%p538_p4)
}
 0x3ae   :  { %s542_s10 = scalar_lea.hbm %s710_s9, 128 }
 0x3af   :  { %p543_p5 = scmp.ne.s32.totalorder %s710_s9, %s542_s10  ;;  %p546_p6 = scmp.lt.u32.totalorder %s542_s10, %s710_s9 }
 0x3b1   :  { %p548_p7 = pnand %p546_p6, %p543_p5 }
 0x3b3   :  { %551 = shalt.err (!%p548_p7)
}
 0x3b4   :  { %439 = dma.vmem_to_hbm [thread:$0]  %s437_s28, 128, %s710_s9, [#allocation3]  }
 0x3b5   :  { %552 = dma.done.wait [#allocation3], 128  }
 0x3b6   :  { %553 = vsyncadd [#allocation3], 4294967168 }
 0x3b7   :  { %443 = vsyncpa [#allocation3], 1 }

</bundles_post_ra>
